<compile_context>
chip_gen: v7x
topology: tpu7x:2x2x1
jax: 0.10.0
libtpu: 0.0.40
codegen_flags: <defaults>
</compile_context>

<pallas_src>
import numpy as np
import jax
import jax.numpy as jnp
from jax.experimental import pallas as pl
from jax.experimental.pallas import tpu as pltpu

# ----- "globals" the PyTorch module expects (chosen deterministically) -----
H_DIM = 32
MAX_CONSIDERED_PED = 4
MLP_DIM = 64            # unused by forward, kept for fidelity
BOTTLENECK_DIM = 32
EMBEDDING_DIM = 16      # pos_embedding is defined but unused in forward
ACTIVATION_RELU = 'relu'
BATCH_NORM = False
DROPOUT = 0
MLP_HIDDEN = 512

PRE_DIM = H_DIM * MAX_CONSIDERED_PED   # 128
OUT_PAD = 128                          # lane-dense output width (sliced to 32 afterwards)
TM_MAX = 512                           # max row tile (VMEM cost still << 32 MiB scoped)


def _round_up(x, m):
    return ((x + m - 1) // m) * m


def _row_tile(n):
    """Row tile: as large as possible to amortize grid-step overhead, but keep at
    least 2 tiles when the batch is big enough so dimension_semantics=("parallel",)
    can shard across both v7x TensorCores (no effect on 1-TC v5e/v6e)."""
    half = (n + 1) // 2
    return max(8, min(TM_MAX, _round_up(half, 8)))


# --------------------------- Pallas kernel --------------------------------
def _mlp_pre_pool_kernel(x_ref, w1_ref, b1_ref, w2_ref, b2_ref, o_ref):
    # x: (tm, 128) f32; w1: (128, 512) bf16; b1: (1, 512) f32
    # w2: (512, 128) bf16 (zero-padded cols 32..127); b2: (1, 128) f32; o: (tm, 128) f32
    x = x_ref[...].astype(jnp.bfloat16)                        # bf16 MXU operand
    h = jnp.dot(x, w1_ref[...], preferred_element_type=jnp.float32) + b1_ref[...]
    h = jnp.maximum(h, 0.0)                                    # ReLU (f32)
    y = jnp.dot(h.astype(jnp.bfloat16), w2_ref[...],
                preferred_element_type=jnp.float32) + b2_ref[...]
    o_ref[...] = jnp.maximum(y, 0.0).astype(o_ref.dtype)       # ReLU, lane-dense store


def mlp_pre_pool_pallas(x, w1, b1, w2, b2):
    """x: (N, 128) f32 -> (N, 32) f32 via Linear(128,512)+ReLU+Linear(512,32)+ReLU."""
    N, D = x.shape
    assert D == PRE_DIM
    tm = _row_tile(N)
    grid = (pl.cdiv(N, tm),)

    # bf16 weights (halves weight DMA, bf16-native MXU); pad second layer to 128 lanes
    # so the output store is full-lane / unmasked. Biases stay f32.
    w1b = w1.astype(jnp.bfloat16)
    w2b = jnp.pad(w2.astype(jnp.bfloat16), ((0, 0), (0, OUT_PAD - BOTTLENECK_DIM)))
    b2p = jnp.pad(b2, ((0, 0), (0, OUT_PAD - BOTTLENECK_DIM)))

    cost = pl.CostEstimate(
        flops=2 * N * (PRE_DIM * MLP_HIDDEN + MLP_HIDDEN * OUT_PAD),
        transcendentals=0,
        bytes_accessed=(N * PRE_DIM * 4                  # x
                        + PRE_DIM * MLP_HIDDEN * 2       # w1 (bf16)
                        + MLP_HIDDEN * 4                 # b1
                        + MLP_HIDDEN * OUT_PAD * 2       # w2 (bf16, padded)
                        + OUT_PAD * 4                    # b2 (padded)
                        + N * OUT_PAD * 4),              # out
    )

    out = pl.pallas_call(
        _mlp_pre_pool_kernel,
        out_shape=jax.ShapeDtypeStruct((N, OUT_PAD), jnp.float32),
        grid=grid,
        in_specs=[
            pl.BlockSpec((tm, PRE_DIM), lambda i: (i, 0)),
            pl.BlockSpec((PRE_DIM, MLP_HIDDEN), lambda i: (0, 0)),   # resident weights
            pl.BlockSpec((1, MLP_HIDDEN), lambda i: (0, 0)),
            pl.BlockSpec((MLP_HIDDEN, OUT_PAD), lambda i: (0, 0)),
            pl.BlockSpec((1, OUT_PAD), lambda i: (0, 0)),
        ],
        out_specs=pl.BlockSpec((tm, OUT_PAD), lambda i: (i, 0)),
        compiler_params=pltpu.CompilerParams(
            dimension_semantics=("parallel",)),
        cost_estimate=cost,
    )(x, w1b, b1, w2b, b2p)
    return out[:, :BOTTLENECK_DIM]


# ------------------------------ glue ---------------------------------------
def init_params(key):
    """Deterministic init mimicking nn.Linear (U[-1/sqrt(fan_in), 1/sqrt(fan_in)])."""
    k1, k2, k3, k4 = jax.random.split(key, 4)
    lim1 = 1.0 / np.sqrt(PRE_DIM)
    lim2 = 1.0 / np.sqrt(MLP_HIDDEN)
    w1 = jax.random.uniform(k1, (PRE_DIM, MLP_HIDDEN), jnp.float32, -lim1, lim1)
    b1 = jax.random.uniform(k2, (1, MLP_HIDDEN), jnp.float32, -lim1, lim1)
    w2 = jax.random.uniform(k3, (MLP_HIDDEN, BOTTLENECK_DIM), jnp.float32, -lim2, lim2)
    b2 = jax.random.uniform(k4, (1, BOTTLENECK_DIM), jnp.float32, -lim2, lim2)
    return w1, b1, w2, b2


def _seq_metadata(seq_start_end, total_ped):
    """Per-ped (start, count, seq_id) arrays from the list of (start, end) tuples."""
    starts = np.zeros((total_ped,), np.int32)
    counts = np.zeros((total_ped,), np.int32)
    seq_ids = np.zeros((total_ped,), np.int32)
    for s, (start, end) in enumerate(seq_start_end):
        starts[start:end] = start
        counts[start:end] = end - start
        seq_ids[start:end] = s
    return jnp.asarray(starts), jnp.asarray(counts), jnp.asarray(seq_ids)


def _build_aggregated(h_flat, last_pos, starts, counts, seq_ids):
    """Vectorized (all sequences at once) version of the torch neighbor-rank gather.

    Torch path per ped i: row = flatten(hidden_local[argsort(argsort(dist_local[i]))]),
    truncated / zero-padded to MAX_CONSIDERED_PED*h_dim.
    """
    total = h_flat.shape[0]
    diff = last_pos[:, None, :] - last_pos[None, :, :]
    # squared distance: same argsort order as euclidean, saves the sqrt
    dist2 = jnp.sum(diff * diff, axis=-1)                     # (T, T)
    same_seq = seq_ids[:, None] == seq_ids[None, :]
    dist2 = jnp.where(same_seq, dist2, jnp.inf)               # mask cross-sequence pairs
    order = jnp.argsort(dist2, axis=1)                        # neighbor order (global)
    ranks = jnp.argsort(order, axis=1)                        # rank of ped k w.r.t. ped i
    # output slot m of ped i holds hidden[ local rank of local ped m ]  (torch semantics)
    slot = jnp.arange(MAX_CONSIDERED_PED, dtype=jnp.int32)    # (MAX,)
    cand = starts[:, None] + slot[None, :]                    # local ped m -> global index
    valid = slot[None, :] < counts[:, None]                   # (T, MAX)
    cand_safe = jnp.where(valid, cand, 0)
    local_rank = jnp.take_along_axis(ranks, cand_safe, axis=1)  # (T, MAX)
    gather = jnp.where(valid, starts[:, None] + local_rank, 0)
    gathered = h_flat[gather]                                 # (T, MAX, H_DIM)
    gathered = jnp.where(valid[:, :, None], gathered, 0.0)
    return gathered.reshape(total, PRE_DIM)


@jax.jit
def _forward_impl(w1, b1, w2, b2, h_flat, last_pos, starts, counts, seq_ids):
    aggregated = _build_aggregated(h_flat, last_pos, starts, counts, seq_ids)
    return mlp_pre_pool_pallas(aggregated, w1, b1, w2, b2)


def aggregation_forward(params, h_states, seq_start_end, last_pos):
    """Mirror of AggregationModule.forward (eval semantics, no dropout/BN)."""
    w1, b1, w2, b2 = params
    h_flat = h_states.reshape(-1, H_DIM)
    starts, counts, seq_ids = _seq_metadata(seq_start_end, h_flat.shape[0])
    return _forward_impl(w1, b1, w2, b2, h_flat, last_pos, starts, counts, seq_ids)


# ----------------------- pure-JAX reference (for checks) -------------------
def _reference_aggregated(h_flat, seq_start_end, last_pos):
    rows = []
    for (start, end) in seq_start_end:
        num_ped = end - start
        hidden = h_flat[start:end]
        feat = last_pos[start:end]
        diff = feat[:, None, :] - feat[None, :, :]
        dist = jnp.sqrt(jnp.sum(diff * diff, axis=-1))
        idx = jnp.argsort(dist, axis=1)
        inv = jnp.argsort(idx, axis=1)                     # inverse permutation per row
        flat = hidden[inv].reshape(num_ped, num_ped * H_DIM)
        if num_ped >= MAX_CONSIDERED_PED:
            row = flat[:, :PRE_DIM]
        else:
            row = jnp.zeros((num_ped, PRE_DIM), jnp.float32).at[:, :num_ped * H_DIM].set(flat)
        rows.append(row)
    return jnp.concatenate(rows, axis=0)


def _reference_mlp(x, w1, b1, w2, b2):
    h = jnp.maximum(x @ w1 + b1, 0.0)
    return jnp.maximum(h @ w2 + b2, 0.0)


# TODO(synk): np.argsort (quicksort) tie-breaking on equal distances may differ from
# jnp.argsort (stable); results differ only on exact distance ties.
# TODO(synk): pos_embedding (Linear(2,16)) is defined by the module but never used in
# forward, so it is not implemented here.
# TODO(synk): the neighbor-rank gather stays in XLA (not scalar-prefetch-fused into the
# kernel); fusing it would save one HBM round-trip of the (N,128) aggregated matrix.

if __name__ == "__main__":
    key = jax.random.PRNGKey(0)
    kp, kh, kpos, kx = jax.random.split(key, 4)

    params = init_params(kp)
    w1, b1, w2, b2 = params

    # Two sequences: 3 peds (< MAX -> zero-pad path) and 5 peds (>= MAX -> truncate)
    seq_start_end = [(0, 3), (3, 8)]
    total_ped = 8
    h_states = jax.random.normal(kh, (1, total_ped, H_DIM), jnp.float32)
    last_pos = jax.random.normal(kpos, (total_ped, 2), jnp.float32)

    out = aggregation_forward(params, h_states, seq_start_end, last_pos)
    out = jax.block_until_ready(out)
    assert out.shape == (total_ped, BOTTLENECK_DIM)
    assert bool(jnp.all(jnp.isfinite(out)))

    # --- correctness: vectorized neighbor gather == per-sequence loop reference ---
    h_flat = h_states.reshape(-1, H_DIM)
    starts, counts, seq_ids = _seq_metadata(seq_start_end, total_ped)
    agg_vec = _build_aggregated(h_flat, last_pos, starts, counts, seq_ids)
    agg_ref = _reference_aggregated(h_flat, seq_start_end, last_pos)
    assert bool(jnp.array_equal(agg_vec, agg_ref))

    # --- correctness: full forward vs plain-JAX f32 MLP (loose tol: bf16 MXU path) ---
    out_ref = _reference_mlp(agg_ref, w1, b1, w2, b2)
    assert bool(jnp.allclose(out, out_ref, rtol=5e-2, atol=5e-2))

    # --- exercise the multi-tile (grid=2, ragged last block) path with a larger batch ---
    x_big = jax.random.normal(kx, (200, PRE_DIM), jnp.float32)
    y_big = jax.block_until_ready(mlp_pre_pool_pallas(x_big, w1, b1, w2, b2))
    y_big_ref = _reference_mlp(x_big, w1, b1, w2, b2)
    assert y_big.shape == (200, BOTTLENECK_DIM)
    assert bool(jnp.allclose(y_big, y_big_ref, rtol=5e-2, atol=5e-2))

    print("KERNEL_OK")
</pallas_src>

<mosaic_0001>
module attributes {stable_mosaic.version = 11 : i64} {
  func.func @_mlp_pre_pool_kernel(%arg0: i32, %arg1: memref<8x128xf32, #tpu.memory_space<vmem>>, %arg2: memref<128x512xbf16, #tpu.memory_space<vmem>>, %arg3: memref<1x512xf32, #tpu.memory_space<vmem>>, %arg4: memref<512x128xbf16, #tpu.memory_space<vmem>>, %arg5: memref<1x128xf32, #tpu.memory_space<vmem>>, %arg6: memref<8x128xf32, #tpu.memory_space<vmem>>) attributes {dimension_semantics = [#tpu.dimension_semantics<parallel>], iteration_bounds = array<i64: 1>, scalar_prefetch = 0 : i64, scratch_operands = 0 : i64, tpu.core_type = #tpu.core_type<tc>, window_params = [{transform_indices = @transform_0, window_bounds = array<i64: 8, 128>}, {pipeline_mode = #tpu.pipeline_mode<synchronous>, transform_indices = @transform_1, window_bounds = array<i64: 128, 512>}, {pipeline_mode = #tpu.pipeline_mode<synchronous>, transform_indices = @transform_2, window_bounds = array<i64: 1, 512>}, {pipeline_mode = #tpu.pipeline_mode<synchronous>, transform_indices = @transform_3, window_bounds = array<i64: 512, 128>}, {pipeline_mode = #tpu.pipeline_mode<synchronous>, transform_indices = @transform_4, window_bounds = array<i64: 1, 128>}, {transform_indices = @transform_5, window_bounds = array<i64: 8, 128>}]} {
    %c0 = arith.constant 0 : index
    %c0_0 = arith.constant 0 : index
    %0 = vector.load %arg1[%c0, %c0_0] : memref<8x128xf32, #tpu.memory_space<vmem>>, vector<8x128xf32>
    %1 = arith.truncf %0 : vector<8x128xf32> to vector<8x128xbf16>
    %c0_1 = arith.constant 0 : index
    %c0_2 = arith.constant 0 : index
    %2 = vector.load %arg2[%c0_1, %c0_2] : memref<128x512xbf16, #tpu.memory_space<vmem>>, vector<128x512xbf16>
    %cst = arith.constant dense<0.000000e+00> : vector<8x512xf32>
    %3 = tpu.matmul %1, %2, %cst {dimension_numbers = #tpu.dot_dimension_numbers<[1], [0], [0], [1], [0, 0, 1, 1], [], []>} : vector<8x128xbf16>, vector<128x512xbf16>, vector<8x512xf32> -> vector<8x512xf32>
    %c0_3 = arith.constant 0 : index
    %c0_4 = arith.constant 0 : index
    %4 = vector.load %arg3[%c0_3, %c0_4] : memref<1x512xf32, #tpu.memory_space<vmem>>, vector<1x512xf32>
    %5 = vector.broadcast %4 : vector<1x512xf32> to vector<8x512xf32>
    %6 = arith.addf %3, %5 : vector<8x512xf32>
    %cst_5 = arith.constant 0.000000e+00 : f32
    %7 = vector.broadcast %cst_5 : f32 to vector<8x512xf32>
    %8 = arith.maximumf %6, %7 : vector<8x512xf32>
    %9 = arith.truncf %8 : vector<8x512xf32> to vector<8x512xbf16>
    %c0_6 = arith.constant 0 : index
    %c0_7 = arith.constant 0 : index
    %10 = vector.load %arg4[%c0_6, %c0_7] : memref<512x128xbf16, #tpu.memory_space<vmem>>, vector<512x128xbf16>
    %cst_8 = arith.constant dense<0.000000e+00> : vector<8x128xf32>
    %11 = tpu.matmul %9, %10, %cst_8 {dimension_numbers = #tpu.dot_dimension_numbers<[1], [0], [0], [1], [0, 0, 1, 1], [], []>} : vector<8x512xbf16>, vector<512x128xbf16>, vector<8x128xf32> -> vector<8x128xf32>
    %c0_9 = arith.constant 0 : index
    %c0_10 = arith.constant 0 : index
    %12 = vector.load %arg5[%c0_9, %c0_10] : memref<1x128xf32, #tpu.memory_space<vmem>>, vector<1x128xf32>
    %13 = vector.broadcast %12 : vector<1x128xf32> to vector<8x128xf32>
    %14 = arith.addf %11, %13 : vector<8x128xf32>
    %cst_11 = arith.constant 0.000000e+00 : f32
    %15 = vector.broadcast %cst_11 : f32 to vector<8x128xf32>
    %16 = arith.maximumf %14, %15 : vector<8x128xf32>
    %c0_12 = arith.constant 0 : index
    %c0_13 = arith.constant 0 : index
    %17 = vector.load %arg6[%c0_12, %c0_13] : memref<8x128xf32, #tpu.memory_space<vmem>>, vector<8x128xf32>
    tpu.vector_store %arg6[%c0_12, %c0_13], %16 {strides = array<i32>} : memref<8x128xf32, #tpu.memory_space<vmem>>, vector<8x128xf32>,
    return
  }
  func.func @transform_0(%arg0: i32) -> (i32, i32) {
    %c0_i32 = arith.constant 0 : i32
    %c0_i32_0 = arith.constant 0 : i32
    return %arg0, %c0_i32 : i32, i32
  }
  func.func @transform_1(%arg0: i32) -> (i32, i32) {
    %c0_i32 = arith.constant 0 : i32
    %c0_i32_0 = arith.constant 0 : i32
    %c0_i32_1 = arith.constant 0 : i32
    return %c0_i32, %c0_i32_0 : i32, i32
  }
  func.func @transform_2(%arg0: i32) -> (i32, i32) {
    %c0_i32 = arith.constant 0 : i32
    %c0_i32_0 = arith.constant 0 : i32
    %c0_i32_1 = arith.constant 0 : i32
    return %c0_i32, %c0_i32_0 : i32, i32
  }
  func.func @transform_3(%arg0: i32) -> (i32, i32) {
    %c0_i32 = arith.constant 0 : i32
    %c0_i32_0 = arith.constant 0 : i32
    %c0_i32_1 = arith.constant 0 : i32
    return %c0_i32, %c0_i32_0 : i32, i32
  }
  func.func @transform_4(%arg0: i32) -> (i32, i32) {
    %c0_i32 = arith.constant 0 : i32
    %c0_i32_0 = arith.constant 0 : i32
    %c0_i32_1 = arith.constant 0 : i32
    return %c0_i32, %c0_i32_0 : i32, i32
  }
  func.func @transform_5(%arg0: i32) -> (i32, i32) {
    %c0_i32 = arith.constant 0 : i32
    %c0_i32_0 = arith.constant 0 : i32
    return %arg0, %c0_i32 : i32, i32
  }
}

</mosaic_0001>

<bundles_post_ra>
// kernel: _forward_impl.1
= control target key start
LH: loop header
LB: loop body
LE: loop exit
PB: predicated region body
PF: predicated region fallthrough
CT: control target
= control target key end

     0   :  { %v902_v2 = vmov 0   ;;  %s1147_s0 = inlined_call_operand.vmem [shape: f32[8,128], index: 0, kind: input, shape index: {}]   ;;  %s1148_s1 = inlined_call_operand.vmem [shape: bf16[128,512], index: 1, kind: input, shape index: {}]   ;;  %s1149_s2 = inlined_call_operand.vmem [shape: f32[1,512], index: 2, kind: input, shape index: {}]   ;;  %s1150_s3 = inlined_call_operand.vmem [shape: bf16[512,128], index: 3, kind: input, shape index: {}]   ;;  %s1151_s4 = inlined_call_operand.vmem [shape: f32[1,128], index: 4, kind: input, shape index: {}]   ;;  %s1152_s5 = inlined_call_operand.hbm [shape: f32[8,128], index: 5, kind: output, shape index: {}]  }
   0x1   :  { %v798_v0 = vld [vmem:[%s1148_s1 + $0x4] ss:$16 sps:$4 sm:$0xff]   ;;  %v800_v1 = vld [vmem:[%s1148_s1 + $0xc] ss:$16 sps:$4 sm:$0xff]   ;;  %270 = vmatprep.mubr.bf16.mxu0 %v902_v2  ;;  %311 = vmatprep.mubr.bf16.mxu1 %v902_v2  ;;  %v802_v3 = vld [vmem:[%s1148_s1] ss:$16 sps:$4 sm:$0xff]  }
   0x2   :  { %238 = vmatprep.subr.bf16.mxu0 %v798_v0  ;;  %v803_v4 = vld [vmem:[%s1148_s1 + $0x8] ss:$16 sps:$4 sm:$0xff]   ;;  %279 = vmatprep.subr.bf16.mxu1 %v800_v1  ;;  %v804_v5 = vld [vmem:[%s1148_s1 + $0x24] ss:$16 sps:$4 sm:$0xff]   ;;  %v806_v6 = vld [vmem:[%s1148_s1 + $0x2c] ss:$16 sps:$4 sm:$0xff]  }
   0x3   :  { %239 = vmatpush1.bf16.msra.mxu0 %v802_v3  ;;  %280 = vmatpush1.bf16.msra.mxu1 %v803_v4  ;;  %v808_v7 = vld [vmem:[%s1148_s1 + $0x20] ss:$16 sps:$4 sm:$0xff]   ;;  %v809_v8 = vld [vmem:[%s1148_s1 + $0x28] ss:$16 sps:$4 sm:$0xff]   ;;  %v810_v9 = vld [vmem:[%s1148_s1 + $0x44] ss:$16 sps:$4 sm:$0xff]  }
   0x4   :  { %240 = vmatprep.subr.bf16.mxu0 %v804_v5  ;;  %281 = vmatprep.subr.bf16.mxu1 %v806_v6  ;;  %v812_v10 = vld [vmem:[%s1148_s1 + $0x4c] ss:$16 sps:$4 sm:$0xff]   ;;  %v814_v11 = vld [vmem:[%s1148_s1 + $0x40] ss:$16 sps:$4 sm:$0xff]   ;;  %v815_v12 = vld [vmem:[%s1148_s1 + $0x48] ss:$16 sps:$4 sm:$0xff]  }
   0x5   :  { %v816_v13 = vld [vmem:[%s1148_s1 + $0x64] ss:$16 sps:$4 sm:$0xff]   ;;  %v818_v14 = vld [vmem:[%s1148_s1 + $0x6c] ss:$16 sps:$4 sm:$0xff]   ;;  %v820_v15 = vld [vmem:[%s1148_s1 + $0x60] ss:$16 sps:$4 sm:$0xff]  }
   0x6   :  { %v821_v16 = vld [vmem:[%s1148_s1 + $0x68] ss:$16 sps:$4 sm:$0xff]   ;;  %v822_v17 = vld [vmem:[%s1148_s1 + $0x84] ss:$16 sps:$4 sm:$0xff]   ;;  %v824_v18 = vld [vmem:[%s1148_s1 + $0x8c] ss:$16 sps:$4 sm:$0xff]  }
   0x7   :  { %241 = vmatpush1.bf16.msra.mxu0 %v808_v7  ;;  %282 = vmatpush1.bf16.msra.mxu1 %v809_v8  ;;  %v826_v19 = vld [vmem:[%s1148_s1 + $0x80] ss:$16 sps:$4 sm:$0xff]   ;;  %v827_v20 = vld [vmem:[%s1148_s1 + $0x88] ss:$16 sps:$4 sm:$0xff]   ;;  %v828_v21 = vld [vmem:[%s1148_s1 + $0xa4] ss:$16 sps:$4 sm:$0xff]  }
   0x8   :  { %242 = vmatprep.subr.bf16.mxu0 %v810_v9  ;;  %283 = vmatprep.subr.bf16.mxu1 %v812_v10  ;;  %v830_v22 = vld [vmem:[%s1148_s1 + $0xac] ss:$16 sps:$4 sm:$0xff]   ;;  %v832_v23 = vld [vmem:[%s1148_s1 + $0xa0] ss:$16 sps:$4 sm:$0xff]   ;;  %v833_v24 = vld [vmem:[%s1148_s1 + $0xa8] ss:$16 sps:$4 sm:$0xff]  }
   0x9   :  { %v834_v25 = vld [vmem:[%s1148_s1 + $0xc4] ss:$16 sps:$4 sm:$0xff]   ;;  %v836_v26 = vld [vmem:[%s1148_s1 + $0xcc] ss:$16 sps:$4 sm:$0xff]   ;;  %v838_v27 = vld [vmem:[%s1148_s1 + $0xc0] ss:$16 sps:$4 sm:$0xff]  }
   0xa   :  { %v839_v28 = vld [vmem:[%s1148_s1 + $0xc8] ss:$16 sps:$4 sm:$0xff]   ;;  %v840_v29 = vld [vmem:[%s1148_s1 + $0xe4] ss:$16 sps:$4 sm:$0xff]   ;;  %v842_v30 = vld [vmem:[%s1148_s1 + $0xec] ss:$16 sps:$4 sm:$0xff]  }
   0xb   :  { %243 = vmatpush1.bf16.msra.mxu0 %v814_v11  ;;  %284 = vmatpush1.bf16.msra.mxu1 %v815_v12  ;;  %v844_v31 = vld [vmem:[%s1148_s1 + $0xe0] ss:$16 sps:$4 sm:$0xff]   ;;  %v845_v32 = vld [vmem:[%s1148_s1 + $0xe8] ss:$16 sps:$4 sm:$0xff]  }
   0xc   :  { %244 = vmatprep.subr.bf16.mxu0 %v816_v13  ;;  %285 = vmatprep.subr.bf16.mxu1 %v818_v14  ;;  %v22_v33 = vld [vmem:[%s1147_s0] sm:$0xff]  ;;  %v850_v39 = vld [vmem:[%s1150_s3 + $0x48] sm:$0xff]   ;;  %v854_v43 = vld [vmem:[%s1150_s3 + $0x50] sm:$0xff]  }
   0xd   :  { %v846_v34 = vld [vmem:[%s1150_s3 + $0x40] sm:$0xff]   ;;  %v23_v37 = vpack.c.bf16 %v22_v33, %v22_v33  ;;  %v851_v40 = vld [vmem:[%s1150_s3 + $0xc8] sm:$0xff]   ;;  %v855_v44 = vld [vmem:[%s1150_s3 + $0xd0] sm:$0xff]  }
   0xe   :  { %v847_v35 = vld [vmem:[%s1150_s3 + $0xc0] sm:$0xff]   ;;  %v852_v41 = vld [vmem:[%s1150_s3 + $0x8] sm:$0xff]   ;;  %v856_v45 = vld [vmem:[%s1150_s3 + $0x10] sm:$0xff]  }
   0xf   :  { %245 = vmatpush1.bf16.msra.mxu0 %v820_v15  ;;  %286 = vmatpush1.bf16.msra.mxu1 %v821_v16  ;;  %v848_v36 = vld [vmem:[%s1150_s3] sm:$0xff]   ;;  %v853_v42 = vld [vmem:[%s1150_s3 + $0x88] sm:$0xff]   ;;  %v857_v46 = vld [vmem:[%s1150_s3 + $0x90] sm:$0xff]  }
  0x10   :  { %246 = vmatprep.subr.bf16.mxu0 %v822_v17  ;;  %287 = vmatprep.subr.bf16.mxu1 %v824_v18  ;;  %v849_v38 = vld [vmem:[%s1150_s3 + $0x80] sm:$0xff]   ;;  %v858_v47 = vld [vmem:[%s1150_s3 + $0x58] sm:$0xff]   ;;  %v866_v55 = vld [vmem:[%s1150_s3 + $0x68] sm:$0xff]  }
  0x11   :  { %v859_v48 = vld [vmem:[%s1150_s3 + $0xd8] sm:$0xff]   ;;  %v862_v51 = vld [vmem:[%s1150_s3 + $0x60] sm:$0xff]   ;;  %v867_v56 = vld [vmem:[%s1150_s3 + $0xe8] sm:$0xff]  }
  0x12   :  { %v860_v49 = vld [vmem:[%s1150_s3 + $0x18] sm:$0xff]   ;;  %v863_v52 = vld [vmem:[%s1150_s3 + $0xe0] sm:$0xff]  }
  0x13   :  { %247 = vmatpush1.bf16.msra.mxu0 %v826_v19  ;;  %288 = vmatpush1.bf16.msra.mxu1 %v827_v20  ;;  %v861_v50 = vld [vmem:[%s1150_s3 + $0x98] sm:$0xff]   ;;  %v864_v53 = vld [vmem:[%s1150_s3 + $0x20] sm:$0xff]  }
  0x14   :  { %248 = vmatprep.subr.bf16.mxu0 %v828_v21  ;;  %289 = vmatprep.subr.bf16.mxu1 %v830_v22  ;;  %v865_v54 = vld [vmem:[%s1150_s3 + $0xa0] sm:$0xff]  }
  0x17   :  { %249 = vmatpush1.bf16.msra.mxu0 %v832_v23  ;;  %290 = vmatpush1.bf16.msra.mxu1 %v833_v24 }
  0x18   :  { %250 = vmatprep.subr.bf16.mxu0 %v834_v25  ;;  %291 = vmatprep.subr.bf16.mxu1 %v836_v26 }
  0x1b   :  { %251 = vmatpush1.bf16.msra.mxu0 %v838_v27  ;;  %292 = vmatpush1.bf16.msra.mxu1 %v839_v28 }
  0x1c   :  { %252 = vmatprep.subr.bf16.mxu0 %v840_v29  ;;  %293 = vmatprep.subr.bf16.mxu1 %v842_v30 }
  0x1f   :  { %253 = vmatpush1.bf16.msra.mxu0 %v844_v31  ;;  %294 = vmatpush1.bf16.msra.mxu1 %v845_v32 }
  0x20   :  { %752 = vmatprep.subr.bf16.mxu0 %v846_v34  ;;  %774 = vmatprep.subr.bf16.mxu1 %v847_v35 }
  0x22   :  { %271 = vmatmul.mubr.bf16.vlgmr.msra.gmra.mrb[0].mxu0 %v23_v37  ;;  %312 = vmatmul.mubr.bf16.vlgmr.msra.gmra.mrb[0].mxu1 %v23_v37 }
  0x23   :  { %753 = vmatpush3.bf16.msra.mxu0 %v848_v36  ;;  %775 = vmatpush3.bf16.msra.mxu1 %v849_v38 }
  0x24   :  { %754 = vmatprep.subr.bf16.mxu0 %v850_v39  ;;  %776 = vmatprep.subr.bf16.mxu1 %v851_v40 }
  0x27   :  { %755 = vmatpush3.bf16.msra.mxu0 %v852_v41  ;;  %777 = vmatpush3.bf16.msra.mxu1 %v853_v42 }
  0x28   :  { %756 = vmatprep.subr.bf16.mxu0 %v854_v43  ;;  %778 = vmatprep.subr.bf16.mxu1 %v855_v44 }
  0x2b   :  { %757 = vmatpush3.bf16.msra.mxu0 %v856_v45  ;;  %779 = vmatpush3.bf16.msra.mxu1 %v857_v46 }
  0x2c   :  { %758 = vmatprep.subr.bf16.mxu0 %v858_v47  ;;  %780 = vmatprep.subr.bf16.mxu1 %v859_v48 }
  0x2f   :  { %759 = vmatpush3.bf16.msra.mxu0 %v860_v49  ;;  %781 = vmatpush3.bf16.msra.mxu1 %v861_v50 }
  0x30   :  { %760 = vmatprep.subr.bf16.mxu0 %v862_v51  ;;  %782 = vmatprep.subr.bf16.mxu1 %v863_v52 }
  0x31   :  { %10 = vsyncpa [#allocation3], 0  ;;  %v868_v57 = vld [vmem:[%s1150_s3 + $0x28] sm:$0xff]   ;;  %v870_v59 = vld [vmem:[%s1150_s3 + $0x70] sm:$0xff]   ;;  %v58_v3 = vlaneseq  ;;  %s903_s19 = smov [#allocation2]  }
  0x32   :  { %v869_v58 = vld [vmem:[%s1150_s3 + $0xa8] sm:$0xff]   ;;  %v871_v60 = vld [vmem:[%s1150_s3 + $0xf0] sm:$0xff]   ;;  %v874_v63 = vld [vmem:[%s1150_s3 + $0x78] sm:$0xff]   ;;  %s679_s20 = sshll.u32 %s903_s19, 4  ;;  %s680_s20 = int_to_ptr.vmem [resolvable:$true] %s679_s20 }
  0x33   :  { %761 = vmatpush3.bf16.msra.mxu0 %v864_v53  ;;  %783 = vmatpush3.bf16.msra.mxu1 %v865_v54  ;;  %v872_v61 = vld [vmem:[%s1150_s3 + $0x30] sm:$0xff]   ;;  %v875_v0 = vld [vmem:[%s1150_s3 + $0xf8] sm:$0xff]   ;;  %v59_v4 = vshrl.u32 %v58_v3, 7  ;;  %v56_v7 = vld [vmem:[%s1149_s2] sm:$0xf]  ;;  %s878_s21 = scalar_lea.vmem %s680_s20, 128  ;;  %p883_p1 = scmp.lt.s32.totalorder %s680_s20, %s680_s20 }
  0x34   :  { %762 = vmatprep.subr.bf16.mxu0 %v866_v55  ;;  %784 = vmatprep.subr.bf16.mxu1 %v867_v56  ;;  %v873_v62 = vld [vmem:[%s1150_s3 + $0xb0] sm:$0xff]   ;;  %v876_v1 = vld [vmem:[%s1150_s3 + $0x38] sm:$0xff]   ;;  %v719_v36 = vld [vmem:[%s1151_s4] ss:$0 sm:$0xff]  ;;  %p879_p0 = scmp.ne.s32.totalorder %s680_s20, %s878_s21  ;;  %p884_p2 = scmp.lt.s32.totalorder %s878_s21, %s878_s21 }
  0x35   :  { %v877_v2 = vld [vmem:[%s1150_s3 + $0xb8] sm:$0xff]   ;;  %v60_v5 = vsub.s32 0, %v59_v4  ;;  %v68_v6 = vsub.s32 2, %v59_v4  ;;  %v64_v8 = vsub.s32 1, %v59_v4  ;;  %v72_v9 = vsub.s32 3, %v59_v4 }
  0x36   :  { %p885_p3 = por %p884_p2, %p883_p1 }
  0x37   :  { %763 = vmatpush3.bf16.msra.mxu0 %v868_v57  ;;  %785 = vmatpush3.bf16.msra.mxu1 %v869_v58  ;;  %v61_v10 = vrot.slane %v56_v7, %v60_v5  ;;  %v69_v11 = vrot.slane %v56_v7, %v68_v6  ;;  %v65_v12 = vrot.slane %v56_v7, %v64_v8 }
  0x38   :  { %764 = vmatprep.subr.bf16.mxu0 %v870_v59  ;;  %786 = vmatprep.subr.bf16.mxu1 %v871_v60  ;;  %v73_v13 = vrot.slane %v56_v7, %v72_v9  ;;  %p886_p4 = pnand %p885_p3, %p879_p0 }
  0x3b   :  { %765 = vmatpush3.bf16.msra.mxu0 %v872_v61  ;;  %787 = vmatpush3.bf16.msra.mxu1 %v873_v62 }
  0x3c   :  { %766 = vmatprep.subr.bf16.mxu0 %v874_v63  ;;  %788 = vmatprep.subr.bf16.mxu1 %v875_v0 }
  0x3f   :  { %767 = vmatpush3.bf16.msra.mxu0 %v876_v1  ;;  %789 = vmatpush3.bf16.msra.mxu1 %v877_v2 }
  0xf5   :  { %v272_v14 = vpop.f32.mrb[0].mxu0  ;;  %v313_v15 = vpop.f32.mrb[0].mxu1 }
  0xf6   :  { %v273_v16 = vadd.f32 %v272_v14, %v61_v10  ;;  %v314_v17 = vadd.f32 %v313_v15, %v69_v11  ;;  %v274_v18 = vpop.f32.mrb[1].mxu0  ;;  %v315_v19 = vpop.f32.mrb[1].mxu1 }
  0xf7   :  { %v275_v20 = vadd.f32 %v274_v18, %v65_v12  ;;  %v316_v21 = vadd.f32 %v315_v19, %v73_v13  ;;  %v276_v22 = vpop.f32.mrb[2].mxu0  ;;  %v317_v23 = vpop.f32.mrb[2].mxu1 }
  0xf8   :  { %v320_v24 = vmax.f32 %v273_v16, 0.0  ;;  %v322_v25 = vmax.f32 %v314_v17, 0.0  ;;  %v277_v26 = vpop.f32.mrb[3].mxu0  ;;  %v318_v27 = vpop.f32.mrb[3].mxu1 }
  0xf9   :  { %v321_v28 = vmax.f32 %v275_v20, 0.0  ;;  %v323_v29 = vmax.f32 %v316_v21, 0.0 }
  0xfa   :  { %v326_v30 = vpack.c.bf16 %v322_v25, %v322_v25  ;;  %v324_v33 = vpack.c.bf16 %v320_v24, %v320_v24 }
  0xfb   :  { %v325_v31 = vpack.c.bf16 %v321_v28, %v321_v28  ;;  %v327_v32 = vpack.c.bf16 %v323_v29, %v323_v29 }
  0xfd   :  { %623 = vmatprep.mubr.bf16.mxu0 %v325_v31  ;;  %663 = vmatprep.mubr.bf16.mxu1 %v327_v32 }
  0xfe   :  { %624 = vmatmul.mubr.bf16.vlgmr.msra.gmra.mrb[4].mxu0 %v324_v33  ;;  %664 = vmatmul.mubr.bf16.vlgmr.msra.gmra.mrb[4].mxu1 %v326_v30 }
 0x1d1   :  { %v768_v34 = vpop.f32.mrb[4].mxu0  ;;  %v790_v35 = vpop.f32.mrb[4].mxu1 }
 0x1d2   :  { %v769_v37 = vpop.f32.mrb[5].mxu0  ;;  %v791_v38 = vpop.f32.mrb[5].mxu1 }
 0x1d3   :  { %v770_v39 = vadd.f32 %v769_v37, %v768_v34  ;;  %v792_v40 = vadd.f32 %v791_v38, %v790_v35  ;;  %v771_v41 = vpop.f32.mrb[6].mxu0  ;;  %v793_v42 = vpop.f32.mrb[6].mxu1 }
 0x1d4   :  { %v772_v43 = vpop.f32.mrb[7].mxu0  ;;  %v794_v44 = vpop.f32.mrb[7].mxu1 }
 0x1d5   :  { %v626_v45 = vadd.f32 %v770_v39, %v719_v36 }
 0x1d7   :  { %v666_v46 = vadd.f32 %v792_v40, %v626_v45 }
 0x1d9   :  { %v671_v47 = vmax.f32 %v666_v46, 0.0 }
 0x1db   :  { %672 = vst [vmem:[#allocation2] sm:$0xff] %v671_v47 }
 0x1dc   :  { %889 = shalt.err (!%p886_p4)
}
 0x1dd   :  { %s890_s23 = scalar_lea.hbm %s1152_s5, 128 }
 0x1de   :  { %p891_p5 = scmp.ne.s32.totalorder %s1152_s5, %s890_s23  ;;  %p894_p6 = scmp.lt.u32.totalorder %s890_s23, %s1152_s5 }
 0x1e0   :  { %p896_p7 = pnand %p894_p6, %p891_p5 }
 0x1e2   :  { %899 = shalt.err (!%p896_p7)
}
 0x1e3   :  { %682 = dma.vmem_to_hbm [thread:$0]  %s680_s20, 128, %s1152_s5, [#allocation3]  }
 0x1e4   :  { %900 = dma.done.wait [#allocation3], 128  }
 0x1e5   :  { %901 = vsyncadd [#allocation3], 4294967168 }
 0x1e6   :  { %686 = vsyncpa [#allocation3], 1 }

</bundles_post_ra>
